<compile_context>
chip_gen: v7x
topology: tpu7x:2x2x1
jax: 0.10.0
libtpu: 0.0.40
codegen_flags: <defaults>
</compile_context>

<pallas_src>
import jax
import jax.numpy as jnp
from jax.experimental import pallas as pl
from jax.experimental.pallas import tpu as pltpu


def _round_up(n: int, m: int) -> int:
    return ((n + m - 1) // m) * m


def iris_mlp_kernel(x_ref, w1_ref, b1_ref, w2_ref, b2_ref, w3_ref, b3_ref, o_ref):
    # x tile: (4, TILE_B) with batch on lanes (fully packed 128-lane vregs).
    x = x_ref[...].astype(jnp.float32)

    # Biases are (out, 1) and broadcast across the lane (batch) dimension.
    h1 = jnp.dot(w1_ref[...], x, preferred_element_type=jnp.float32) + b1_ref[...]
    h1 = jnp.maximum(h1, 0.0)

    h2 = jnp.dot(w2_ref[...], h1, preferred_element_type=jnp.float32) + b2_ref[...]
    h2 = jnp.maximum(h2, 0.0)

    out = jnp.dot(w3_ref[...], h2, preferred_element_type=jnp.float32) + b3_ref[...]
    o_ref[...] = out.astype(o_ref.dtype)


def iris_net_forward_lane_major(x_t, params, *, tile_b: int = 65536, out_dtype=None):
    """Lane-major entry point: x_t is (4, Bp) with Bp % 128 == 0, returns (3, Bp).

    No wrapper-side layout passes: use this directly when the producer/consumer
    already works in the batch-on-lanes layout.
    """
    four, b_pad = x_t.shape
    assert four == 4, x_t.shape
    assert b_pad % 128 == 0, "lane-major batch dim must be a multiple of 128"
    out_dtype = out_dtype or x_t.dtype

    # Tile: multiple of 128, divides b_pad (every block full -> unmasked vst),
    # capped at 128K so the double-buffered footprint fits v7x's 64 MiB VMEM.
    tile_b = min(_round_up(max(tile_b, 128), 128), b_pad, 131072)
    while b_pad % tile_b:
        tile_b -= 128
    # Keep >= 2 grid steps when possible so "parallel" uses both v7x TCs.
    if b_pad // tile_b == 1 and b_pad >= 256 and (b_pad // 2) % 128 == 0:
        tile_b = b_pad // 2
    grid = (b_pad // tile_b,)

    # VMEM budget: x/out blocks (sublane-padded to 8 rows, double-buffered)
    # plus two f32 (16, TILE_B) intermediates; add slack, stay below v7x 64 MiB.
    io_bytes = max(jnp.dtype(x_t.dtype).itemsize, jnp.dtype(out_dtype).itemsize)
    vmem_need = tile_b * (2 * 2 * 8 * io_bytes + 2 * 16 * 4) + (2 << 20)
    vmem_limit = int(min(max(vmem_need, 32 << 20), 56 << 20))

    w1, b1 = params["w1"], params["b1"]
    w2, b2 = params["w2"], params["b2"]
    w3, b3 = params["w3"], params["b3"]

    # Tiny weights/biases: whole-array blocks with a constant index_map so they
    # stay VMEM-resident across all grid steps.
    const = lambda a: pl.BlockSpec(a.shape, lambda i: (0,) * a.ndim)

    return pl.pallas_call(
        iris_mlp_kernel,
        out_shape=jax.ShapeDtypeStruct((3, b_pad), out_dtype),
        grid=grid,
        in_specs=[
            pl.BlockSpec((4, tile_b), lambda i: (0, i)),   # x tile (batch on lanes)
            const(w1), const(b1),
            const(w2), const(b2),
            const(w3), const(b3),
        ],
        out_specs=pl.BlockSpec((3, tile_b), lambda i: (0, i)),
        compiler_params=pltpu.CompilerParams(
            dimension_semantics=("parallel",),
            vmem_limit_bytes=vmem_limit,
        ),
    )(x_t, w1, b1, w2, b2, w3, b3)


def iris_net_forward(x, params, *, tile_b: int = 65536, io_dtype=jnp.float32):
    """PyTorch-convention wrapper: x (B, 4) float32 -> (B, 3) float32.

    params: PyTorch nn.Linear layouts:
        w1 (16, 4),  b1 (16, 1)
        w2 (16, 16), b2 (16, 1)
        w3 (3, 16),  b3 (3, 1)
    io_dtype=jnp.bfloat16 halves x/out HBM traffic (accumulation stays f32) but
    changes numerics slightly vs the f32 reference; default keeps exact parity.
    """
    B = x.shape[0]

    # Tile selection: multiple of 128, capped at 128K (v7x VMEM), >= 2 grid
    # steps whenever the batch allows it.
    tile_b = _round_up(max(min(tile_b, 131072), 128), 128)
    b_ceil = _round_up(B, 128)
    tile_b = min(tile_b, b_ceil)
    if _round_up(B, tile_b) == tile_b and b_ceil > 128:
        tile_b = _round_up(pl.cdiv(tile_b, 2), 128)
    b_pad = _round_up(B, tile_b)

    # Single fusible layout pass (pad + transpose). For zero extra HBM traffic
    # produce (4, B) upstream and call iris_net_forward_lane_major directly.
    x_t = jnp.pad(x.T.astype(io_dtype), ((0, 0), (0, b_pad - B)))
    out_t = iris_net_forward_lane_major(x_t, params, tile_b=tile_b, out_dtype=io_dtype)
    return out_t[:, :B].T.astype(jnp.float32)


def init_params(key):
    """Deterministic init matching nn.Linear layouts (W: (out, in), b: (out, 1))."""
    ks = jax.random.split(key, 6)

    def linear(kw, kb, fan_in, fan_out):
        bound = 1.0 / jnp.sqrt(fan_in)
        w = jax.random.uniform(kw, (fan_out, fan_in), jnp.float32, -bound, bound)
        b = jax.random.uniform(kb, (fan_out, 1), jnp.float32, -bound, bound)
        return w, b

    w1, b1 = linear(ks[0], ks[1], 4, 16)
    w2, b2 = linear(ks[2], ks[3], 16, 16)
    w3, b3 = linear(ks[4], ks[5], 16, 3)
    return {"w1": w1, "b1": b1, "w2": w2, "b2": b2, "w3": w3, "b3": b3}


def reference_forward(x, p):
    h1 = jnp.maximum(x @ p["w1"].T + p["b1"].T, 0.0)
    h2 = jnp.maximum(h1 @ p["w2"].T + p["b2"].T, 0.0)
    return h2 @ p["w3"].T + p["b3"].T


if __name__ == "__main__":
    key = jax.random.PRNGKey(0)
    kx, kx2, kp = jax.random.split(key, 3)
    params = init_params(kp)

    # jit the full forward so the wrapper's pad/transpose fuses with neighbours.
    fwd = jax.jit(iris_net_forward)

    # Small, spec-sized batch.
    batch = 8
    x = jax.random.normal(kx, (batch, 4), jnp.float32)
    out = jax.block_until_ready(fwd(x, params))
    ref = reference_forward(x, params)
    assert out.shape == (batch, 3), out.shape
    assert jnp.allclose(out, ref, atol=1e-5, rtol=1e-5), "mismatch vs reference (B=8)"

    # Non-multiple-of-128 batch: exercises padding + a 2-step ("parallel") grid.
    batch2 = 300
    x2 = jax.random.normal(kx2, (batch2, 4), jnp.float32)
    out2 = jax.block_until_ready(fwd(x2, params))
    ref2 = reference_forward(x2, params)
    assert out2.shape == (batch2, 3), out2.shape
    assert jnp.allclose(out2, ref2, atol=1e-5, rtol=1e-5), "mismatch vs reference (B=300)"

    print("KERNEL_OK")
</pallas_src>

<mosaic_0001>
module attributes {stable_mosaic.version = 11 : i64} {
  func.func @iris_mlp_kernel(%arg0: i32, %arg1: memref<4x128xf32, #tpu.memory_space<vmem>>, %arg2: memref<16x4xf32, #tpu.memory_space<vmem>>, %arg3: memref<16x1xf32, #tpu.memory_space<vmem>>, %arg4: memref<16x16xf32, #tpu.memory_space<vmem>>, %arg5: memref<16x1xf32, #tpu.memory_space<vmem>>, %arg6: memref<3x16xf32, #tpu.memory_space<vmem>>, %arg7: memref<3x1xf32, #tpu.memory_space<vmem>>, %arg8: memref<3x128xf32, #tpu.memory_space<vmem>>) attributes {dimension_semantics = [#tpu.dimension_semantics<parallel>], iteration_bounds = array<i64: 1>, scalar_prefetch = 0 : i64, scratch_operands = 0 : i64, tpu.core_type = #tpu.core_type<tc>, window_params = [{transform_indices = @transform_0, window_bounds = array<i64: 4, 128>}, {pipeline_mode = #tpu.pipeline_mode<synchronous>, transform_indices = @transform_1, window_bounds = array<i64: 16, 4>}, {pipeline_mode = #tpu.pipeline_mode<synchronous>, transform_indices = @transform_2, window_bounds = array<i64: 16, 1>}, {pipeline_mode = #tpu.pipeline_mode<synchronous>, transform_indices = @transform_3, window_bounds = array<i64: 16, 16>}, {pipeline_mode = #tpu.pipeline_mode<synchronous>, transform_indices = @transform_4, window_bounds = array<i64: 16, 1>}, {pipeline_mode = #tpu.pipeline_mode<synchronous>, transform_indices = @transform_5, window_bounds = array<i64: 3, 16>}, {pipeline_mode = #tpu.pipeline_mode<synchronous>, transform_indices = @transform_6, window_bounds = array<i64: 3, 1>}, {transform_indices = @transform_7, window_bounds = array<i64: 3, 128>}]} {
    %c0 = arith.constant 0 : index
    %c0_0 = arith.constant 0 : index
    %0 = vector.load %arg1[%c0, %c0_0] : memref<4x128xf32, #tpu.memory_space<vmem>>, vector<4x128xf32>
    %c0_1 = arith.constant 0 : index
    %c0_2 = arith.constant 0 : index
    %1 = vector.load %arg2[%c0_1, %c0_2] : memref<16x4xf32, #tpu.memory_space<vmem>>, vector<16x4xf32>
    %cst = arith.constant dense<0.000000e+00> : vector<16x128xf32>
    %2 = tpu.matmul %1, %0, %cst {dimension_numbers = #tpu.dot_dimension_numbers<[1], [0], [0], [1], [0, 0, 1, 1], [], []>} : vector<16x4xf32>, vector<4x128xf32>, vector<16x128xf32> -> vector<16x128xf32>
    %c0_3 = arith.constant 0 : index
    %c0_4 = arith.constant 0 : index
    %3 = vector.load %arg3[%c0_3, %c0_4] : memref<16x1xf32, #tpu.memory_space<vmem>>, vector<16x1xf32>
    %4 = vector.broadcast %3 : vector<16x1xf32> to vector<16x128xf32>
    %5 = arith.addf %2, %4 : vector<16x128xf32>
    %cst_5 = arith.constant 0.000000e+00 : f32
    %6 = vector.broadcast %cst_5 : f32 to vector<16x128xf32>
    %7 = arith.maximumf %5, %6 : vector<16x128xf32>
    %c0_6 = arith.constant 0 : index
    %c0_7 = arith.constant 0 : index
    %8 = vector.load %arg4[%c0_6, %c0_7] : memref<16x16xf32, #tpu.memory_space<vmem>>, vector<16x16xf32>
    %cst_8 = arith.constant dense<0.000000e+00> : vector<16x128xf32>
    %9 = tpu.matmul %8, %7, %cst_8 {dimension_numbers = #tpu.dot_dimension_numbers<[1], [0], [0], [1], [0, 0, 1, 1], [], []>} : vector<16x16xf32>, vector<16x128xf32>, vector<16x128xf32> -> vector<16x128xf32>
    %c0_9 = arith.constant 0 : index
    %c0_10 = arith.constant 0 : index
    %10 = vector.load %arg5[%c0_9, %c0_10] : memref<16x1xf32, #tpu.memory_space<vmem>>, vector<16x1xf32>
    %11 = vector.broadcast %10 : vector<16x1xf32> to vector<16x128xf32>
    %12 = arith.addf %9, %11 : vector<16x128xf32>
    %cst_11 = arith.constant 0.000000e+00 : f32
    %13 = vector.broadcast %cst_11 : f32 to vector<16x128xf32>
    %14 = arith.maximumf %12, %13 : vector<16x128xf32>
    %c0_12 = arith.constant 0 : index
    %c0_13 = arith.constant 0 : index
    %15 = vector.load %arg6[%c0_12, %c0_13] : memref<3x16xf32, #tpu.memory_space<vmem>>, vector<3x16xf32>
    %cst_14 = arith.constant dense<0.000000e+00> : vector<3x128xf32>
    %16 = tpu.matmul %15, %14, %cst_14 {dimension_numbers = #tpu.dot_dimension_numbers<[1], [0], [0], [1], [0, 0, 1, 1], [], []>} : vector<3x16xf32>, vector<16x128xf32>, vector<3x128xf32> -> vector<3x128xf32>
    %c0_15 = arith.constant 0 : index
    %c0_16 = arith.constant 0 : index
    %17 = vector.load %arg7[%c0_15, %c0_16] : memref<3x1xf32, #tpu.memory_space<vmem>>, vector<3x1xf32>
    %18 = vector.broadcast %17 : vector<3x1xf32> to vector<3x128xf32>
    %19 = arith.addf %16, %18 : vector<3x128xf32>
    %c0_17 = arith.constant 0 : index
    %c0_18 = arith.constant 0 : index
    %20 = vector.load %arg8[%c0_17, %c0_18] : memref<3x128xf32, #tpu.memory_space<vmem>>, vector<3x128xf32>
    tpu.vector_store %arg8[%c0_17, %c0_18], %19 {strides = array<i32>} : memref<3x128xf32, #tpu.memory_space<vmem>>, vector<3x128xf32>,
    return
  }
  func.func @transform_0(%arg0: i32) -> (i32, i32) {
    %c0_i32 = arith.constant 0 : i32
    %c0_i32_0 = arith.constant 0 : i32
    return %c0_i32, %arg0 : i32, i32
  }
  func.func @transform_1(%arg0: i32) -> (i32, i32) {
    %c0_i32 = arith.constant 0 : i32
    %c0_i32_0 = arith.constant 0 : i32
    %c0_i32_1 = arith.constant 0 : i32
    return %c0_i32, %c0_i32_0 : i32, i32
  }
  func.func @transform_2(%arg0: i32) -> (i32, i32) {
    %c0_i32 = arith.constant 0 : i32
    %c0_i32_0 = arith.constant 0 : i32
    %c0_i32_1 = arith.constant 0 : i32
    return %c0_i32, %c0_i32_0 : i32, i32
  }
  func.func @transform_3(%arg0: i32) -> (i32, i32) {
    %c0_i32 = arith.constant 0 : i32
    %c0_i32_0 = arith.constant 0 : i32
    %c0_i32_1 = arith.constant 0 : i32
    return %c0_i32, %c0_i32_0 : i32, i32
  }
  func.func @transform_4(%arg0: i32) -> (i32, i32) {
    %c0_i32 = arith.constant 0 : i32
    %c0_i32_0 = arith.constant 0 : i32
    %c0_i32_1 = arith.constant 0 : i32
    return %c0_i32, %c0_i32_0 : i32, i32
  }
  func.func @transform_5(%arg0: i32) -> (i32, i32) {
    %c0_i32 = arith.constant 0 : i32
    %c0_i32_0 = arith.constant 0 : i32
    %c0_i32_1 = arith.constant 0 : i32
    return %c0_i32, %c0_i32_0 : i32, i32
  }
  func.func @transform_6(%arg0: i32) -> (i32, i32) {
    %c0_i32 = arith.constant 0 : i32
    %c0_i32_0 = arith.constant 0 : i32
    %c0_i32_1 = arith.constant 0 : i32
    return %c0_i32, %c0_i32_0 : i32, i32
  }
  func.func @transform_7(%arg0: i32) -> (i32, i32) {
    %c0_i32 = arith.constant 0 : i32
    %c0_i32_0 = arith.constant 0 : i32
    return %c0_i32, %arg0 : i32, i32
  }
}

</mosaic_0001>

<bundles_post_ra>
// kernel: iris_net_forward.1
= control target key start
LH: loop header
LB: loop body
LE: loop exit
PB: predicated region body
PF: predicated region fallthrough
CT: control target
= control target key end

     0   :  { %vm48_vm0 = vcmask 1043456   ;;  %vm41_vm1 = vcmask 31744   ;;  %v360_v3 = vmov 0   ;;  %vm143_vm2 = vcmask 130048   ;;  %s443_s0 = inlined_call_operand.vmem [shape: f32[4,128], index: 0, kind: input, shape index: {}]   ;;  %s444_s1 = inlined_call_operand.vmem [shape: f32[16,4], index: 1, kind: input, shape index: {}]   ;;  %s445_s2 = inlined_call_operand.vmem [shape: f32[16,1], index: 2, kind: input, shape index: {}]   ;;  %s446_s6 = inlined_call_operand.vmem [shape: f32[3,1], index: 6, kind: input, shape index: {}]   ;;  %s447_s3 = inlined_call_operand.vmem [shape: f32[16,16], index: 3, kind: input, shape index: {}]   ;;  %s448_s4 = inlined_call_operand.vmem [shape: f32[16,1], index: 4, kind: input, shape index: {}]   ;;  %s449_s5 = inlined_call_operand.vmem [shape: f32[3,16], index: 5, kind: input, shape index: {}]   ;;  %s450_s7 = inlined_call_operand.vmem [shape: f32[3,128], index: 7, kind: output, shape index: {}]  }
   0x1   :  { %v26_v0 = vld [vmem:[%s443_s0] sm:$0xf]  ;;  %v28_v2 = vld [vmem:[%s444_s1 + $0x8] sm:$0xff]  ;;  %358 = vset.pattern.permute.xlu0 %v360_v3  ;;  %359 = vset.pattern.permute.xlu1 %v360_v3  ;;  %v361_v20 = vmov 0.0|0.0   ;;  %vm362_vm3 = vmmov 0   ;;  %v363_v21 = vmov 0.0  }
   0x2   :  { %v27_v1 = vld [vmem:[%s444_s1] sm:$0xff]  ;;  %328 = vmatprep.subr.msk.mxu0 %vm48_vm0, %v26_v0  ;;  %v30_v5 = vld [vmem:[%s445_s2 + $0x8] sm:$0xff] }
   0x3   :  { %330 = vmatprep.mubr.msk.f32.mxu0 %vm41_vm1, %v27_v1  ;;  %v29_v4 = vld [vmem:[%s445_s2] sm:$0xff]  ;;  %329 = vmatpush3.msk.msra.mxu0 %vm48_vm0, %v26_v0  ;;  %v132_v9 = vld [vmem:[%s448_s4 + $0x8] sm:$0xff] }
   0x4   :  { %33 = vperm.xlu0 %358, %v29_v4   ;;  %331 = vmatmul.mubr.msk.f32.vlgmr.msra.gmra.mrb[0].mxu0 %vm41_vm1, %v28_v2  ;;  %v228_v6 = vld [vmem:[%s446_s6] sm:$0x7]  ;;  %v130_v19 = vld [vmem:[%s447_s3 + $0x8] sm:$0xff] }
   0x5   :  { %v129_v7 = vld [vmem:[%s447_s3] sm:$0xff]  ;;  %351 = vmatprep.subr.bf16.mxu0 %v361_v20  ;;  %344 = vmatprep.mubr.msk.f32.mxu0 %vm362_vm3, %v363_v21 }
   0x6   :  { %337 = vmatprep.mubr.msk.f32.mxu1 %vm143_vm2, %v129_v7  ;;  %v131_v8 = vld [vmem:[%s448_s4] sm:$0xff] }
   0x7   :  { %135 = vperm.xlu1 %359, %v131_v8   ;;  %v227_v31 = vld [vmem:[%s449_s5] sm:$0x7] }
   0x8   :  { %38 = vperm.xlu0 %358, %v30_v5  }
   0xb   :  { %140 = vperm.xlu1 %359, %v132_v9  }
   0xc   :  { %231 = vperm.xlu0 %358, %v228_v6  }
  0x83   :  { %v34_v10 = vpop.permute.xlu0 %33 }
  0x86   :  { %v136_v22 = vpop.permute.xlu1 %135 }
  0x87   :  { %v39_v11 = vpop.permute.xlu0 %38 }
  0x8a   :  { %v141_v23 = vpop.permute.xlu1 %140 }
  0x8b   :  { %v232_v32 = vpop.permute.xlu0 %231 }
  0xd7   :  { %v332_v12 = vpop.f32.mrb[0].mxu0 }
  0xd8   :  { %v124_v13 = vadd.f32 %v332_v12, %v39_v11  ;;  %v118_v14 = vpop.f32.mrb[1].mxu0 }
  0xd9   :  { %v119_v15 = vadd.f32 %v118_v14, %v34_v10 }
  0xda   :  { %v128_v16 = vmax.f32 %v124_v13, 0.0 }
  0xdb   :  { %v127_v17 = vmax.f32 %v119_v15, 0.0 }
  0xdd   :  { %v347_v18 = vpack.c.bf16 %v128_v16, %v127_v17 }
  0xdf   :  { %348 = vmatprep.subr.bf16.mxu1 %v347_v18 }
  0xe0   :  { %350 = vmatpush3.bf16.msra.mxu1 %v347_v18 }
  0xe3   :  { %338 = vmatmul.mubr.msk.f32.vlgmr.msra.gmra.mrb[0].mxu1 %vm143_vm2, %v130_v19 }
 0x1b6   :  { %v339_v24 = vpop.f32.mrb[0].mxu1 }
 0x1b7   :  { %v222_v25 = vadd.f32 %v339_v24, %v141_v23  ;;  %v216_v26 = vpop.f32.mrb[1].mxu1 }
 0x1b8   :  { %v217_v27 = vadd.f32 %v216_v26, %v136_v22 }
 0x1b9   :  { %v226_v28 = vmax.f32 %v222_v25, 0.0 }
 0x1ba   :  { %v225_v29 = vmax.f32 %v217_v27, 0.0 }
 0x1bc   :  { %v352_v30 = vpack.c.bf16 %v226_v28, %v225_v29 }
 0x1be   :  { %353 = vmatpush3.bf16.msra.mxu0 %v352_v30 }
 0x1c1   :  { %345 = vmatmul.mubr.msk.f32.vlgmr.msra.gmra.mrb[2].mxu0 %vm143_vm2, %v227_v31 }
 0x294   :  { %v303_v33 = vpop.f32.mrb[2].mxu0 }
 0x295   :  { %v304_v34 = vadd.f32 %v303_v33, %v232_v32  ;;  %v346_v35 = vpop.f32.mrb[3].mxu0 }
 0x297   :  { %307 = vst [vmem:[%s450_s7] sm:$0x7] %v304_v34 }

</bundles_post_ra>
